<compile_context>
chip_gen: v6e
topology: v6e:2x2x1
jax: 0.10.0
libtpu: 0.0.40
codegen_flags: <defaults>
</compile_context>

<pallas_src>
import math

import jax
import jax.numpy as jnp
from jax.experimental import pallas as pl
from jax.experimental.pallas import tpu as pltpu


def build_positional_encoding(d_model: int, max_seq_len: int = 30,
                              dtype=jnp.float32) -> jnp.ndarray:
    """Same formula as the PyTorch __init__. Returns (1, max_seq_len, d_model)."""
    position = jnp.arange(0, max_seq_len, dtype=jnp.float32)[:, None]          # (L, 1)
    div_term = jnp.exp(
        jnp.arange(0, d_model, 2, dtype=jnp.float32) * (-math.log(10000.0) / d_model)
    )                                                                            # (D/2,)
    angles = position * div_term                                                 # (L, D/2)
    pe = jnp.zeros((max_seq_len, d_model), dtype=jnp.float32)
    pe = pe.at[:, 0::2].set(jnp.sin(angles))
    pe = pe.at[:, 1::2].set(jnp.cos(angles))
    # Stored in the compute dtype so the in-kernel add is single-dtype
    # (avoids a forced f32 VPU path / implicit downcast on store).
    return pe[None, :, :].astype(dtype)                                          # (1, L, D)


def _pe_add_kernel(x_ref, pe_ref, o_ref):
    # (tb, tl) + (1, tl) broadcast add; explicit cast keeps the store dtype-safe.
    o_ref[...] = (x_ref[...] + pe_ref[...]).astype(o_ref.dtype)


def _divisor_tile(dim: int, align: int, cap: int) -> int:
    """Largest multiple of `align` that divides `dim` and is <= cap.

    Falls back to the full dim, which is always a legal block extent
    (block == array dim), so the grid divides exactly and no ragged
    edge blocks are ever generated.
    """
    if dim <= cap:
        return dim
    if dim % align != 0:
        return dim
    t = (cap // align) * align
    while t >= align:
        if dim % t == 0:
            return t
        t -= align
    return dim


@jax.jit
def positional_encoding_forward(x: jnp.ndarray, pe: jnp.ndarray) -> jnp.ndarray:
    """x: (B, S, D); pe: (1, max_seq_len, D) -> x + pe[:, :S] (same as PyTorch)."""
    B, S, D = x.shape
    max_seq_len = pe.shape[1]
    if S > max_seq_len:
        raise ValueError(f"seq_len={S} exceeds max_seq_len={max_seq_len}")

    pe_slice = pe[:, :S, :].astype(x.dtype)          # (1, S, D), matches x dtype

    # Lane-dense layout: collapse (S, D) so the minor dim is a big multiple of
    # 128 lanes; stores become full-width unmasked vst.
    L = S * D
    x2 = x.reshape(B, L)
    pe2 = pe_slice.reshape(1, L)

    # Lane tile: multiple of 128, capped at 16384 lanes (64 KiB per f32 row).
    tl = _divisor_tile(L, 128, 16384)
    # Batch tile: multiple of 8, sized so one x block stays ~<= 4 MiB so that
    # double-buffered x/out plus the single PE block fit v7x's 64 MiB VMEM.
    row_bytes = tl * x.dtype.itemsize
    tb = _divisor_tile(B, 8, max(8, (4 * 1024 * 1024) // max(row_bytes, 1)))

    grid = (B // tb, L // tl)   # exact: _divisor_tile guarantees divisibility

    out2 = pl.pallas_call(
        _pe_add_kernel,
        out_shape=jax.ShapeDtypeStruct((B, L), x.dtype),
        grid_spec=pltpu.PrefetchScalarGridSpec(
            num_scalar_prefetch=0,
            grid=grid,
            in_specs=[
                # x tile: lane-dense, several batch rows per step
                pl.BlockSpec((tb, tl), lambda i, j: (i, j)),
                # PE tile: constant batch index -> DMA'd once per lane-tile,
                # broadcast over the batch rows inside the kernel.
                pl.BlockSpec((1, tl), lambda i, j: (0, j)),
            ],
            out_specs=pl.BlockSpec((tb, tl), lambda i, j: (i, j)),
        ),
        # In-place add: output aliases x's buffer (no extra HBM output
        # allocation; full traffic win when the caller donates x).
        input_output_aliases={0: 0},
        compiler_params=pltpu.CompilerParams(
            dimension_semantics=("parallel", "parallel"),
            vmem_limit_bytes=32 * 1024 * 1024,
        ),
    )(x2, pe2)

    return out2.reshape(B, S, D)


if __name__ == "__main__":
    batch, seq, d_model = 2, 8, 32
    max_seq_len = 30

    key = jax.random.PRNGKey(0)
    x = jax.random.normal(key, (batch, seq, d_model), dtype=jnp.float32)

    pe = build_positional_encoding(d_model, max_seq_len, dtype=x.dtype)

    # Reference in plain JAX (same math as the PyTorch forward), computed first.
    ref = x + pe[:, :seq, :]

    out = positional_encoding_forward(x, pe)
    out = jax.block_until_ready(out)

    assert out.shape == (batch, seq, d_model)
    assert jnp.allclose(out, ref, atol=1e-6, rtol=1e-6), "mismatch vs reference"

    print("KERNEL_OK")
</pallas_src>

<mosaic_0001>
module attributes {stable_mosaic.version = 11 : i64} {
  func.func @_pe_add_kernel(%arg0: i32, %arg1: i32, %arg2: memref<2x256xf32, #tpu.memory_space<vmem>>, %arg3: memref<1x256xf32, #tpu.memory_space<vmem>>, %arg4: memref<2x256xf32, #tpu.memory_space<vmem>>) attributes {dimension_semantics = [#tpu.dimension_semantics<parallel>, #tpu.dimension_semantics<parallel>], iteration_bounds = array<i64: 1, 1>, scalar_prefetch = 0 : i64, scratch_operands = 0 : i64, tpu.core_type = #tpu.core_type<tc>, window_params = [{transform_indices = @transform_0, window_bounds = array<i64: 2, 256>}, {transform_indices = @transform_1, window_bounds = array<i64: 1, 256>}, {transform_indices = @transform_2, window_bounds = array<i64: 2, 256>}]} {
    %c0 = arith.constant 0 : index
    %c0_0 = arith.constant 0 : index
    %0 = vector.load %arg2[%c0, %c0_0] : memref<2x256xf32, #tpu.memory_space<vmem>>, vector<2x256xf32>
    %c0_1 = arith.constant 0 : index
    %c0_2 = arith.constant 0 : index
    %1 = vector.load %arg3[%c0_1, %c0_2] : memref<1x256xf32, #tpu.memory_space<vmem>>, vector<1x256xf32>
    %2 = vector.broadcast %1 : vector<1x256xf32> to vector<2x256xf32>
    %3 = arith.addf %0, %2 : vector<2x256xf32>
    %c0_3 = arith.constant 0 : index
    %c0_4 = arith.constant 0 : index
    %4 = vector.load %arg4[%c0_3, %c0_4] : memref<2x256xf32, #tpu.memory_space<vmem>>, vector<2x256xf32>
    tpu.vector_store %arg4[%c0_3, %c0_4], %3 {strides = array<i32>} : memref<2x256xf32, #tpu.memory_space<vmem>>, vector<2x256xf32>,
    return
  }
  func.func @transform_0(%arg0: i32, %arg1: i32) -> (i32, i32) {
    %c0_i32 = arith.constant 0 : i32
    return %arg0, %arg1 : i32, i32
  }
  func.func @transform_1(%arg0: i32, %arg1: i32) -> (i32, i32) {
    %c0_i32 = arith.constant 0 : i32
    %c0_i32_0 = arith.constant 0 : i32
    return %c0_i32, %arg1 : i32, i32
  }
  func.func @transform_2(%arg0: i32, %arg1: i32) -> (i32, i32) {
    %c0_i32 = arith.constant 0 : i32
    return %arg0, %arg1 : i32, i32
  }
}

</mosaic_0001>

<bundles_post_ra>
// kernel: positional_encoding_forward.1
= control target key start
LH: loop header
LB: loop body
LE: loop exit
PB: predicated region body
PF: predicated region fallthrough
CT: control target
= control target key end

     0   :  { %v14_v0 = vlaneseq  ;;  %v38_v1 = vmov 1983009808   ;;  %s63_s1 = inlined_call_operand.vmem [shape: f32[1,256], index: 1, kind: input, shape index: {}]   ;;  %s64_s0 = inlined_call_operand.vmem [shape: f32[2,256], index: 0, kind: input, shape index: {}, may-alias: {0,2}]   ;;  %s65_s2 = inlined_call_operand.vmem [shape: f32[2,256], index: 2, kind: output, shape index: {}, may-alias: {0,2}]  }
   0x1   :  { %v24_v2 = vunpack.c.l.s4 %v38_v1  ;;  %v12_v4 = vld [vmem:[%s63_s1] sm:$0x3] }
   0x2   :  { %v15_v3 = vshrl.u32 %v14_v0, 7  ;;  %v11_v12 = vld [vmem:[%s64_s0] sm:$0xf] }
   0x3   :  { %v25_v5 = vunpack.c.0.s8 %v24_v2 }
   0x4   :  { %v16_v6 = vsub.s32 0, %v15_v3  ;;  %v20_v7 = vsub.s32 1, %v15_v3 }
   0x5   :  { %v28_v10 = vsub.s32 %v25_v5, %v15_v3 }
   0x6   :  { %v17_v8 = vrot.slane %v12_v4, %v16_v6  ;;  %v21_v9 = vrot.slane %v12_v4, %v20_v7 }
   0x8   :  { %v22_v11 = vcombine.low %v17_v8, %v21_v9 }
   0xa   :  { %v29_v13 = vrot.slane %v22_v11, %v28_v10 }
   0xc   :  { %v31_v14 = vadd.f32 %v29_v13, %v11_v12 }
   0xe   :  { %32 = vst [vmem:[%s65_s2] sm:$0xf] %v31_v14 }

</bundles_post_ra>
